<compile_context>
chip_gen: v5e
topology: v5e:2x2
jax: 0.10.0
libtpu: 0.0.40
codegen_flags: <defaults>
</compile_context>

<pallas_src>
import functools

import jax
import jax.numpy as jnp
from jax.experimental import pallas as pl
from jax.experimental.pallas import tpu as pltpu


def _round_up(n, m):
    return ((n + m - 1) // m) * m


def encoder_kernel(x_ref, w1_ref, b1_ref, w2_ref, b2_ref, o_ref, *, h2):
    # In-kernel f32 -> bf16 cast of the streamed x tile (VPU cast is free
    # filler here; avoids an extra wrapper-side HBM pass over x).
    x = x_ref[...].astype(jnp.bfloat16)
    # (TB, F) bf16 @ (F, 128) bf16 -> f32 accumulator on the MXU.
    h = jnp.dot(x, w1_ref[...], preferred_element_type=jnp.float32)
    # bias + ReLU in f32 on full (8,128) vregs.
    h = jnp.maximum(h + b1_ref[...], 0.0)
    # Second MXU pass, f32 accumulation.
    out = jnp.dot(h.astype(jnp.bfloat16), w2_ref[...],
                  preferred_element_type=jnp.float32)
    # Store only the h2 (=3) real columns: narrow masked store, but the vst
    # slot has huge slack (kernel is DMA-bound).  If masked vst.msk ever
    # shows up as a bottleneck in the bundle, fall back to a 128-lane output.
    o_ref[...] = (out[:, :h2] + b2_ref[...]).astype(o_ref.dtype)


def prepare_params(w1, b1, w2, b2):
    """Pad/cast weights ONCE, outside the per-forward path.

    Zero-padding is exact: padded hidden columns are ReLU(0 + 0) = 0 and the
    corresponding padded w2 rows are 0, so they contribute nothing.
    """
    F, H1 = w1.shape
    H2 = w2.shape[1]
    H1p = _round_up(H1, 128)   # lane-dense hidden dim for the MXU
    H2p = _round_up(H2, 128)   # padded only for the second matmul's N

    w1p = jnp.zeros((F, H1p), jnp.bfloat16).at[:, :H1].set(w1.astype(jnp.bfloat16))
    b1p = jnp.zeros((1, H1p), jnp.float32).at[:, :H1].set(
        b1.reshape(1, H1).astype(jnp.float32))
    w2p = jnp.zeros((H1p, H2p), jnp.bfloat16).at[:H1, :H2].set(w2.astype(jnp.bfloat16))
    b2p = b2.reshape(1, H2).astype(jnp.float32)
    return w1p, b1p, w2p, b2p, H2


@functools.partial(jax.jit, static_argnames=("h2", "block_b"))
def encoder_forward(x, w1p, b1p, w2p, b2p, *, h2, block_b=1024):
    B, F = x.shape
    H1p = w1p.shape[1]
    H2p = w2p.shape[1]

    # Pad the batch only to the 8-row sublane granule (cheap, and only when
    # B is not already a multiple of 8).  x stays f32 — no wrapper cast.
    Bp = _round_up(B, 8)
    if Bp != B:
        x = jnp.zeros((Bp, F), x.dtype).at[:B].set(x)

    # Batch tile: big (1024) to amortize per-step overhead; no over-pad of
    # the batch — ragged last tile handled by the cdiv grid.
    TB = min(block_b, Bp)
    if TB == Bp and Bp >= 256:
        # Single-tile grid would idle v7x's second TensorCore: split in two.
        TB = _round_up(-(-Bp // 2), 8)

    grid = (pl.cdiv(Bp, TB),)

    cost = pl.CostEstimate(
        flops=2 * Bp * (F * H1p + H1p * H2p),
        transcendentals=0,
        bytes_accessed=(Bp * F * 4                       # f32 x stream
                        + w1p.size * 2 + w2p.size * 2    # bf16 weights (resident)
                        + b1p.size * 4 + b2p.size * 4    # f32 biases
                        + Bp * h2 * 4),                  # narrow f32 output
    )

    out = pl.pallas_call(
        functools.partial(encoder_kernel, h2=h2),
        out_shape=jax.ShapeDtypeStruct((Bp, h2), jnp.float32),
        grid=grid,
        in_specs=[
            pl.BlockSpec((TB, F), lambda i: (i, 0)),      # f32 x streams
            pl.BlockSpec((F, H1p), lambda i: (0, 0)),     # weights stay resident
            pl.BlockSpec((1, H1p), lambda i: (0, 0)),
            pl.BlockSpec((H1p, H2p), lambda i: (0, 0)),
            pl.BlockSpec((1, h2), lambda i: (0, 0)),
        ],
        out_specs=pl.BlockSpec((TB, h2), lambda i: (i, 0)),
        compiler_params=pltpu.CompilerParams(
            dimension_semantics=("parallel",)),
        cost_estimate=cost,
    )(x, w1p, b1p, w2p, b2p)

    return out[:B] if Bp != B else out


def init_params(key, in_features=28 * 28 * 1, hiddens=(64, 3)):
    """Deterministic init mimicking PyTorch's default nn.Linear init
    (uniform in +/- 1/sqrt(fan_in)). Weights stored (in, out) so the
    kernel computes x @ W + b."""
    k1, k2, k3, k4 = jax.random.split(key, 4)
    h1, h2 = hiddens
    bound1 = 1.0 / jnp.sqrt(jnp.float32(in_features))
    bound2 = 1.0 / jnp.sqrt(jnp.float32(h1))
    w1 = jax.random.uniform(k1, (in_features, h1), jnp.float32, -bound1, bound1)
    b1 = jax.random.uniform(k2, (1, h1), jnp.float32, -bound1, bound1)
    w2 = jax.random.uniform(k3, (h1, h2), jnp.float32, -bound2, bound2)
    b2 = jax.random.uniform(k4, (1, h2), jnp.float32, -bound2, bound2)
    return w1, b1, w2, b2


if __name__ == "__main__":
    key = jax.random.PRNGKey(0)
    kx, kp = jax.random.split(key)

    B = 2
    img_w, img_h, img_c = 28, 28, 1
    F_in = img_w * img_h * img_c
    hiddens = (64, 3)

    # flattened images, as the PyTorch Encoder's forward expects
    x = jax.random.normal(kx, (B, F_in), dtype=jnp.float32)
    w1, b1, w2, b2 = init_params(kp, F_in, hiddens)

    # Pad/cast weights once (outside the per-forward path).
    w1p, b1p, w2p, b2p, h2 = prepare_params(w1, b1, w2, b2)

    out = encoder_forward(x, w1p, b1p, w2p, b2p, h2=h2)
    out = jax.block_until_ready(out)

    # sanity check against plain-JAX f32 reference (loose tolerance: kernel
    # casts x / weights to bf16 on the MXU path, with f32 accumulation)
    ref = jnp.maximum(x @ w1 + b1, 0.0) @ w2 + b2
    assert out.shape == (B, hiddens[1])
    assert jnp.allclose(out, ref, atol=5e-2, rtol=5e-2), (
        jnp.max(jnp.abs(out - ref)))

    print("KERNEL_OK")
</pallas_src>

<mosaic_0001>
module attributes {stable_mosaic.version = 11 : i64} {
  func.func @encoder_kernel(%arg0: i32, %arg1: memref<8x784xf32, #tpu.memory_space<vmem>>, %arg2: memref<784x128xbf16, #tpu.memory_space<vmem>>, %arg3: memref<1x128xf32, #tpu.memory_space<vmem>>, %arg4: memref<128x128xbf16, #tpu.memory_space<vmem>>, %arg5: memref<1x3xf32, #tpu.memory_space<vmem>>, %arg6: memref<8x3xf32, #tpu.memory_space<vmem>>) attributes {dimension_semantics = [#tpu.dimension_semantics<parallel>], iteration_bounds = array<i64: 1>, scalar_prefetch = 0 : i64, scratch_operands = 0 : i64, tpu.core_type = #tpu.core_type<tc>, window_params = [{transform_indices = @transform_0, window_bounds = array<i64: 8, 784>}, {pipeline_mode = #tpu.pipeline_mode<synchronous>, transform_indices = @transform_1, window_bounds = array<i64: 784, 128>}, {pipeline_mode = #tpu.pipeline_mode<synchronous>, transform_indices = @transform_2, window_bounds = array<i64: 1, 128>}, {pipeline_mode = #tpu.pipeline_mode<synchronous>, transform_indices = @transform_3, window_bounds = array<i64: 128, 128>}, {pipeline_mode = #tpu.pipeline_mode<synchronous>, transform_indices = @transform_4, window_bounds = array<i64: 1, 3>}, {transform_indices = @transform_5, window_bounds = array<i64: 8, 3>}]} {
    %c0 = arith.constant 0 : index
    %c0_0 = arith.constant 0 : index
    %0 = vector.load %arg1[%c0, %c0_0] : memref<8x784xf32, #tpu.memory_space<vmem>>, vector<8x784xf32>
    %1 = arith.truncf %0 : vector<8x784xf32> to vector<8x784xbf16>
    %c0_1 = arith.constant 0 : index
    %c0_2 = arith.constant 0 : index
    %2 = vector.load %arg2[%c0_1, %c0_2] : memref<784x128xbf16, #tpu.memory_space<vmem>>, vector<784x128xbf16>
    %cst = arith.constant dense<0.000000e+00> : vector<8x128xf32>
    %3 = tpu.matmul %1, %2, %cst {dimension_numbers = #tpu.dot_dimension_numbers<[1], [0], [0], [1], [0, 0, 1, 1], [], []>} : vector<8x784xbf16>, vector<784x128xbf16>, vector<8x128xf32> -> vector<8x128xf32>
    %c0_3 = arith.constant 0 : index
    %c0_4 = arith.constant 0 : index
    %4 = vector.load %arg3[%c0_3, %c0_4] : memref<1x128xf32, #tpu.memory_space<vmem>>, vector<1x128xf32>
    %5 = vector.broadcast %4 : vector<1x128xf32> to vector<8x128xf32>
    %6 = arith.addf %3, %5 : vector<8x128xf32>
    %cst_5 = arith.constant 0.000000e+00 : f32
    %7 = vector.broadcast %cst_5 : f32 to vector<8x128xf32>
    %8 = arith.maximumf %6, %7 : vector<8x128xf32>
    %9 = arith.truncf %8 : vector<8x128xf32> to vector<8x128xbf16>
    %c0_6 = arith.constant 0 : index
    %c0_7 = arith.constant 0 : index
    %10 = vector.load %arg4[%c0_6, %c0_7] : memref<128x128xbf16, #tpu.memory_space<vmem>>, vector<128x128xbf16>
    %cst_8 = arith.constant dense<0.000000e+00> : vector<8x128xf32>
    %11 = tpu.matmul %9, %10, %cst_8 {dimension_numbers = #tpu.dot_dimension_numbers<[1], [0], [0], [1], [0, 0, 1, 1], [], []>} : vector<8x128xbf16>, vector<128x128xbf16>, vector<8x128xf32> -> vector<8x128xf32>
    %12 = vector.extract_strided_slice %11 {offsets = [0, 0], sizes = [8, 3], strides = [1, 1]} : vector<8x128xf32> to vector<8x3xf32>
    %c0_9 = arith.constant 0 : index
    %c0_10 = arith.constant 0 : index
    %13 = vector.load %arg5[%c0_9, %c0_10] : memref<1x3xf32, #tpu.memory_space<vmem>>, vector<1x3xf32>
    %14 = vector.broadcast %13 : vector<1x3xf32> to vector<8x3xf32>
    %15 = arith.addf %12, %14 : vector<8x3xf32>
    %c0_11 = arith.constant 0 : index
    %c0_12 = arith.constant 0 : index
    %16 = vector.load %arg6[%c0_11, %c0_12] : memref<8x3xf32, #tpu.memory_space<vmem>>, vector<8x3xf32>
    tpu.vector_store %arg6[%c0_11, %c0_12], %15 {strides = array<i32>} : memref<8x3xf32, #tpu.memory_space<vmem>>, vector<8x3xf32>,
    return
  }
  func.func @transform_0(%arg0: i32) -> (i32, i32) {
    %c0_i32 = arith.constant 0 : i32
    %c0_i32_0 = arith.constant 0 : i32
    return %arg0, %c0_i32 : i32, i32
  }
  func.func @transform_1(%arg0: i32) -> (i32, i32) {
    %c0_i32 = arith.constant 0 : i32
    %c0_i32_0 = arith.constant 0 : i32
    %c0_i32_1 = arith.constant 0 : i32
    return %c0_i32, %c0_i32_0 : i32, i32
  }
  func.func @transform_2(%arg0: i32) -> (i32, i32) {
    %c0_i32 = arith.constant 0 : i32
    %c0_i32_0 = arith.constant 0 : i32
    %c0_i32_1 = arith.constant 0 : i32
    return %c0_i32, %c0_i32_0 : i32, i32
  }
  func.func @transform_3(%arg0: i32) -> (i32, i32) {
    %c0_i32 = arith.constant 0 : i32
    %c0_i32_0 = arith.constant 0 : i32
    %c0_i32_1 = arith.constant 0 : i32
    return %c0_i32, %c0_i32_0 : i32, i32
  }
  func.func @transform_4(%arg0: i32) -> (i32, i32) {
    %c0_i32 = arith.constant 0 : i32
    %c0_i32_0 = arith.constant 0 : i32
    %c0_i32_1 = arith.constant 0 : i32
    return %c0_i32, %c0_i32_0 : i32, i32
  }
  func.func @transform_5(%arg0: i32) -> (i32, i32) {
    %c0_i32 = arith.constant 0 : i32
    %c0_i32_0 = arith.constant 0 : i32
    return %arg0, %c0_i32 : i32, i32
  }
}

</mosaic_0001>

<bundles_post_ra>
// kernel: encoder_forward.1
= control target key start
LH: loop header
LB: loop body
LE: loop exit
PB: predicated region body
PF: predicated region fallthrough
CT: control target
= control target key end

     0   :  { %10 = vsyncpa [#allocation3], 0  ;;  %s950_s21 = smov [#allocation2]   ;;  %s951_s23 = smov 64   ;;  %s1040_s0 = inlined_call_operand.vmem [shape: f32[8,784], index: 0, kind: input, shape index: {}]   ;;  %s1041_s1 = inlined_call_operand.hbm [shape: bf16[784,128], index: 1, kind: input, shape index: {}]   ;;  %s1042_s2 = inlined_call_operand.vmem [shape: f32[1,128], index: 2, kind: input, shape index: {}]   ;;  %s1043_s3 = inlined_call_operand.vmem [shape: bf16[128,128], index: 3, kind: input, shape index: {}]   ;;  %s1044_s4 = inlined_call_operand.vmem [shape: f32[1,3], index: 4, kind: input, shape index: {}]   ;;  %s1045_s5 = inlined_call_operand.vmem [shape: f32[8,3], index: 5, kind: output, shape index: {}]  }
   0x1   :  { %s17_s20 = sshll.u32 %s1041_s1, 4  ;;  %s19_s22 = sshll.u32 %s950_s21, 4  ;;  %s18_s20 = int_to_ptr.hbm [resolvable:$true] %s17_s20  ;;  %s20_s22 = int_to_ptr.vmem [resolvable:$true] %s19_s22 }
   0x2   :  { %s952_s24 = smov 4  }
   0x3   :  { %25 = dma.hbm_to_vmem [thread:$0]  %s18_s20, 6272, %s20_s22, [#allocation3], %s951_s23, %s951_s23, %s952_s24  }
   0x4   :  { %948 = dma.done.wait [#allocation3], 6272  }
   0x5   :  { %949 = vsyncadd [#allocation3], 4294961024  ;;  %v869_v0 = vld [vmem:[#allocation2 + $0x38] sm:$0xff]  ;;  %v868_v3 = vld [vmem:[#allocation2 + $0x30] sm:$0xff]  ;;  %vm447_vm0 = vcmask 130048   ;;  %vm626_vm1 = vcmask 23552  }
   0x6   :  { %v877_v1 = vld [vmem:[#allocation2 + $0x78] sm:$0xff]  ;;  %451 = vmatpush.bf16.msra.mxu0 %v869_v0  ;;  %v876_v4 = vld [vmem:[#allocation2 + $0x70] sm:$0xff]  ;;  %v867_v8 = vld [vmem:[#allocation2 + $0x28] sm:$0xff] }
   0x7   :  { %v885_v2 = vld [vmem:[#allocation2 + $0xb8] sm:$0xff]  ;;  %464 = vmatpush.bf16.msra.mxu1 %v877_v1  ;;  %v884_v5 = vld [vmem:[#allocation2 + $0xb0] sm:$0xff]  ;;  %v875_v9 = vld [vmem:[#allocation2 + $0x68] sm:$0xff] }
   0x8   :  { %477 = vmatpush.bf16.msra.mxu2 %v885_v2  ;;  %v893_v6 = vld [vmem:[#allocation2 + $0xf8] sm:$0xff]  ;;  %v892_v7 = vld [vmem:[#allocation2 + $0xf0] sm:$0xff]  ;;  %v883_v10 = vld [vmem:[#allocation2 + $0xa8] sm:$0xff] }
   0x9   :  { %490 = vmatpush.bf16.msra.mxu3 %v893_v6  ;;  %v891_v11 = vld [vmem:[#allocation2 + $0xe8] sm:$0xff]  ;;  %v866_v12 = vld [vmem:[#allocation2 + $0x20] sm:$0xff]  ;;  %v865_v16 = vld [vmem:[#allocation2 + $0x18] sm:$0xff] }
   0xa   :  { %452 = vmatpush.bf16.msra.mxu0 %v868_v3  ;;  %v874_v13 = vld [vmem:[#allocation2 + $0x60] sm:$0xff]  ;;  %v873_v17 = vld [vmem:[#allocation2 + $0x58] sm:$0xff]  ;;  %v864_v20 = vld [vmem:[#allocation2 + $0x10] sm:$0xff] }
   0xb   :  { %465 = vmatpush.bf16.msra.mxu1 %v876_v4  ;;  %v882_v14 = vld [vmem:[#allocation2 + $0xa0] sm:$0xff]  ;;  %v881_v18 = vld [vmem:[#allocation2 + $0x98] sm:$0xff]  ;;  %v872_v21 = vld [vmem:[#allocation2 + $0x50] sm:$0xff] }
   0xc   :  { %478 = vmatpush.bf16.msra.mxu2 %v884_v5  ;;  %v890_v15 = vld [vmem:[#allocation2 + $0xe0] sm:$0xff]  ;;  %v889_v19 = vld [vmem:[#allocation2 + $0xd8] sm:$0xff]  ;;  %v880_v22 = vld [vmem:[#allocation2 + $0x90] sm:$0xff] }
   0xd   :  { %491 = vmatpush.bf16.msra.mxu3 %v892_v7  ;;  %v888_v23 = vld [vmem:[#allocation2 + $0xd0] sm:$0xff]  ;;  %v863_v24 = vld [vmem:[#allocation2 + $0x8] sm:$0xff]  ;;  %v862_v27 = vld [vmem:[#allocation2] sm:$0xff] }
   0xe   :  { %453 = vmatpush.bf16.msra.mxu0 %v867_v8  ;;  %v871_v25 = vld [vmem:[#allocation2 + $0x48] sm:$0xff]  ;;  %v870_v29 = vld [vmem:[#allocation2 + $0x40] sm:$0xff]  ;;  %v901_v32 = vld [vmem:[#allocation2 + $0x138] sm:$0xff] }
   0xf   :  { %466 = vmatpush.bf16.msra.mxu1 %v875_v9  ;;  %v879_v26 = vld [vmem:[#allocation2 + $0x88] sm:$0xff]  ;;  %v37_v30 = vld [vmem:[%s1040_s0] sm:$0xff]  ;;  %v909_v33 = vld [vmem:[#allocation2 + $0x178] sm:$0xff] }
  0x10   :  { %479 = vmatpush.bf16.msra.mxu2 %v883_v10  ;;  %v887_v28 = vld [vmem:[#allocation2 + $0xc8] sm:$0xff]  ;;  %v878_v34 = vld [vmem:[#allocation2 + $0x80] sm:$0xff]  ;;  %v39_v35 = vld [vmem:[%s1040_s0 + $0x10] sm:$0xff]  ;;  %v44_v36 = vpack.c.bf16 %v37_v30, %v37_v30 }
  0x11   :  { %492 = vmatpush.bf16.msra.mxu3 %v891_v11  ;;  %v38_v31 = vld [vmem:[%s1040_s0 + $0x8] sm:$0xff]  ;;  %v886_v38 = vld [vmem:[#allocation2 + $0xc0] sm:$0xff]  ;;  %v40_v40 = vld [vmem:[%s1040_s0 + $0x18] sm:$0xff]  ;;  %v46_v43 = vpack.c.bf16 %v39_v35, %v39_v35 }
  0x12   :  { %454 = vmatpush.bf16.msra.mxu0 %v866_v12  ;;  %v45_v37 = vpack.c.bf16 %v38_v31, %v38_v31  ;;  %v910_v39 = vld [vmem:[#allocation2 + $0x180] sm:$0xff]  ;;  %v900_v41 = vld [vmem:[#allocation2 + $0x130] sm:$0xff]  ;;  %v47_v44 = vpack.c.bf16 %v40_v40, %v40_v40  ;;  %v899_v45 = vld [vmem:[#allocation2 + $0x128] sm:$0xff] }
  0x13   :  { %467 = vmatpush.bf16.msra.mxu1 %v874_v13  ;;  %v908_v42 = vld [vmem:[#allocation2 + $0x170] sm:$0xff]  ;;  %v907_v46 = vld [vmem:[#allocation2 + $0x168] sm:$0xff]  ;;  %v898_v47 = vld [vmem:[#allocation2 + $0x120] sm:$0xff] }
  0x14   :  { %480 = vmatpush.bf16.msra.mxu2 %v882_v14  ;;  %v906_v48 = vld [vmem:[#allocation2 + $0x160] sm:$0xff]  ;;  %v897_v49 = vld [vmem:[#allocation2 + $0x118] sm:$0xff]  ;;  %v43_v51 = vld [vmem:[%s1040_s0 + $0x30] sm:$0xff] }
  0x15   :  { %493 = vmatpush.bf16.msra.mxu3 %v890_v15  ;;  %v905_v50 = vld [vmem:[#allocation2 + $0x158] sm:$0xff]  ;;  %v896_v52 = vld [vmem:[#allocation2 + $0x110] sm:$0xff]  ;;  %v50_v54 = vpack.c.bf16 %v43_v51, %v43_v51  ;;  %v895_v55 = vld [vmem:[#allocation2 + $0x108] sm:$0xff] }
  0x16   :  { %455 = vmatpush.bf16.msra.mxu0 %v865_v16  ;;  %v904_v53 = vld [vmem:[#allocation2 + $0x150] sm:$0xff]  ;;  %v903_v56 = vld [vmem:[#allocation2 + $0x148] sm:$0xff]  ;;  %v894_v57 = vld [vmem:[#allocation2 + $0x100] sm:$0xff] }
  0x17   :  { %468 = vmatpush.bf16.msra.mxu1 %v873_v17  ;;  %v902_v58 = vld [vmem:[#allocation2 + $0x140] sm:$0xff]  ;;  %v42_v60 = vld [vmem:[%s1040_s0 + $0x28] sm:$0xff]  ;;  %v918_v63 = vld [vmem:[%s1043_s3 + $0x38] sm:$0xff] }
  0x18   :  { %481 = vmatpush.bf16.msra.mxu2 %v881_v18  ;;  %v41_v59 = vld [vmem:[%s1040_s0 + $0x20] sm:$0xff]  ;;  %v49_v62 = vpack.c.bf16 %v42_v60, %v42_v60  ;;  %v917_v0 = vld [vmem:[%s1043_s3 + $0x30] sm:$0xff]  ;;  %v916_v1 = vld [vmem:[%s1043_s3 + $0x28] sm:$0xff] }
  0x19   :  { %494 = vmatpush.bf16.msra.mxu3 %v889_v19  ;;  %v48_v61 = vpack.c.bf16 %v41_v59, %v41_v59  ;;  %v915_v2 = vld [vmem:[%s1043_s3 + $0x20] sm:$0xff]  ;;  %v914_v3 = vld [vmem:[%s1043_s3 + $0x18] sm:$0xff]  ;;  %v913_v4 = vld [vmem:[%s1043_s3 + $0x10] sm:$0xff] }
  0x1a   :  { %456 = vmatpush.bf16.msra.mxu0 %v864_v20  ;;  %v912_v5 = vld [vmem:[%s1043_s3 + $0x8] sm:$0xff]  ;;  %v911_v8 = vld [vmem:[%s1043_s3] sm:$0xff] }
  0x1b   :  { %469 = vmatpush.bf16.msra.mxu1 %v872_v21  ;;  %v922_v13 = vld [vmem:[%s1042_s2] ss:$0 sm:$0xff] }
  0x1c   :  { %482 = vmatpush.bf16.msra.mxu2 %v880_v22  ;;  %v923_v31 = vld [vmem:[%s1044_s4] ss:$0 sm:$0xff] }
  0x1d   :  { %495 = vmatpush.bf16.msra.mxu3 %v888_v23 }
  0x1e   :  { %457 = vmatpush.bf16.msra.mxu0 %v863_v24 }
  0x1f   :  { %470 = vmatpush.bf16.msra.mxu1 %v871_v25 }
  0x20   :  { %483 = vmatpush.bf16.msra.mxu2 %v879_v26 }
  0x21   :  { %496 = vmatpush.bf16.msra.mxu3 %v887_v28 }
  0x22   :  { %458 = vmatpush.bf16.msra.mxu0 %v862_v27 }
  0x23   :  { %471 = vmatpush.bf16.msra.mxu1 %v870_v29 }
  0x24   :  { %484 = vmatpush.bf16.msra.mxu2 %v878_v34 }
  0x25   :  { %459 = vmatmul.bf16.vlgmr.msra.gmra.mxu0 %v44_v36  ;;  %497 = vmatpush.bf16.msra.mxu3 %v886_v38 }
  0x26   :  { %503 = vmatpush.bf16.msrb.mxu0 %v901_v32  ;;  %472 = vmatmul.bf16.vlgmr.msra.gmra.mxu1 %v45_v37 }
  0x27   :  { %516 = vmatpush.bf16.msrb.mxu1 %v909_v33  ;;  %485 = vmatmul.bf16.vlgmr.msra.gmra.mxu2 %v46_v43 }
  0x28   :  { %536 = vmatpush.bf16.msrb.mxu2 %v910_v39  ;;  %498 = vmatmul.bf16.vlgmr.msra.gmra.mxu3 %v47_v44 }
  0x29   :  { %608 = vmatpush.bf16.msrb.mxu3 %v918_v63 }
  0x2a   :  { %504 = vmatpush.bf16.msrb.mxu0 %v900_v41 }
  0x2b   :  { %517 = vmatpush.bf16.msrb.mxu1 %v908_v42 }
  0x2d   :  { %609 = vmatpush.bf16.msrb.mxu3 %v917_v0 }
  0x2e   :  { %505 = vmatpush.bf16.msrb.mxu0 %v899_v45 }
  0x2f   :  { %518 = vmatpush.bf16.msrb.mxu1 %v907_v46 }
  0x31   :  { %610 = vmatpush.bf16.msrb.mxu3 %v916_v1 }
  0x32   :  { %506 = vmatpush.bf16.msrb.mxu0 %v898_v47 }
  0x33   :  { %519 = vmatpush.bf16.msrb.mxu1 %v906_v48 }
  0x35   :  { %611 = vmatpush.bf16.msrb.mxu3 %v915_v2 }
  0x36   :  { %507 = vmatpush.bf16.msrb.mxu0 %v897_v49 }
  0x37   :  { %520 = vmatpush.bf16.msrb.mxu1 %v905_v50  ;;  %829 = vmatmul.msk.bf16.vlgmr.msrb.gmra.mxu2 %vm447_vm0, %v50_v54 }
  0x39   :  { %612 = vmatpush.bf16.msrb.mxu3 %v914_v3 }
  0x3a   :  { %508 = vmatpush.bf16.msrb.mxu0 %v896_v52 }
  0x3b   :  { %521 = vmatpush.bf16.msrb.mxu1 %v904_v53 }
  0x3d   :  { %613 = vmatpush.bf16.msrb.mxu3 %v913_v4 }
  0x3e   :  { %509 = vmatpush.bf16.msrb.mxu0 %v895_v55 }
  0x3f   :  { %522 = vmatpush.bf16.msrb.mxu1 %v903_v56 }
  0x41   :  { %614 = vmatpush.bf16.msrb.mxu3 %v912_v5 }
  0x42   :  { %510 = vmatpush.bf16.msrb.mxu0 %v894_v57 }
  0x43   :  { %523 = vmatpush.bf16.msrb.mxu1 %v902_v58 }
  0x45   :  { %511 = vmatmul.bf16.vlgmr.msrb.gmra.mxu0 %v48_v61  ;;  %615 = vmatpush.bf16.msrb.mxu3 %v911_v8 }
  0x46   :  { %524 = vmatmul.bf16.vlgmr.msrb.gmra.mxu1 %v49_v62 }
  0xa2   :  { %v460_v6 = vpop.f32.mrf.mxu0 }
  0xa3   :  { %v473_v7 = vpop.f32.mrf.mxu1  ;;  %v461_v14 = vadd.f32 %v922_v13, %v460_v6 }
  0xa5   :  { %v474_v17 = vadd.f32 %v473_v7, %v461_v14 }
  0xaa   :  { %v462_v9 = vpop.f32.mrf.mxu0  ;;  %v486_v11 = vpop.f32.mrf.mxu2 }
  0xab   :  { %v475_v10 = vpop.f32.mrf.mxu1  ;;  %v499_v12 = vpop.f32.mrf.mxu3  ;;  %v487_v18 = vadd.f32 %v486_v11, %v474_v17 }
  0xad   :  { %v500_v20 = vadd.f32 %v499_v12, %v487_v18 }
  0xb2   :  { %v488_v15 = vpop.f32.mrf.mxu2 }
  0xb3   :  { %v501_v16 = vpop.f32.mrf.mxu3 }
  0xba   :  { %v538_v19 = vpop.f32.mrf.mxu2 }
  0xc2   :  { %v512_v21 = vpop.f32.mrf.mxu0  ;;  %v540_v25 = vpop.f32.mrf.mxu2 }
  0xc3   :  { %v525_v22 = vpop.f32.mrf.mxu1  ;;  %v513_v23 = vadd.f32 %v512_v21, %v500_v20 }
  0xc5   :  { %v526_v24 = vadd.f32 %v525_v22, %v513_v23 }
  0xc7   :  { %v539_v26 = vadd.f32 %v538_v19, %v526_v24 }
  0xc9   :  { %v542_v27 = vmax.f32 %v539_v26, 0.0 }
  0xca   :  { %v514_v28 = vpop.f32.mrf.mxu0 }
  0xcb   :  { %v527_v29 = vpop.f32.mrf.mxu1  ;;  %v543_v30 = vpack.c.bf16 %v542_v27, %v542_v27 }
  0xcd   :  { %616 = vmatmul.bf16.vlgmr.msrb.gmra.mxu3 %v543_v30 }
 0x150   :  { %v617_v32 = vpop.f32.mrf.mxu3 }
 0x151   :  { %v625_v33 = vadd.f32 %v923_v31, %v617_v32 }
 0x153   :  { %627 = vst.msk [vmem:[%s1045_s5] sm:$0xff] %vm626_vm1, %v625_v33 }
 0x158   :  { %v619_v34 = vpop.f32.mrf.mxu3 }
 0x159   :  { %632 = vsyncpa [#allocation3], 1 }

</bundles_post_ra>
